<compile_context>
chip_gen: v6e
topology: v6e:2x2x1
jax: 0.10.0
libtpu: 0.0.40
codegen_flags: <defaults>
</compile_context>

<pallas_src>
import jax
import jax.numpy as jnp
from jax.experimental import pallas as pl
from jax.experimental.pallas import tpu as pltpu


# -----------------------------------------------------------------------------
# 1) Zero-traffic identity: aliased output, no data movement inside the kernel.
# -----------------------------------------------------------------------------
def _identity_alias_kernel(x_hbm_ref, o_hbm_ref):
    # The output HBM buffer aliases the input HBM buffer, so the data is
    # already in place: nothing to load, compute, store, or DMA.
    del x_hbm_ref, o_hbm_ref


def identity(x):
    """nn.Identity forward: returns an array equal to x (same shape/dtype).

    Zero bytes are moved by the kernel itself; true zero-copy end-to-end
    requires the caller to donate x (otherwise XLA adds one defensive copy).
    """
    if x.size == 0:
        return x
    return pl.pallas_call(
        _identity_alias_kernel,
        out_shape=jax.ShapeDtypeStruct(x.shape, x.dtype),
        in_specs=[pl.BlockSpec(memory_space=pl.ANY)],
        out_specs=pl.BlockSpec(memory_space=pl.ANY),
        input_output_aliases={0: 0},
    )(x)


# -----------------------------------------------------------------------------
# 2) Materialized identity: single whole-ref HBM->HBM DMA.
#    No grid, no VMEM round trip, no pad/reshape/slice plumbing; works for any
#    shape and dtype and runs at HBM bandwidth (read once + write once).
# -----------------------------------------------------------------------------
def _identity_dma_kernel(x_hbm_ref, o_hbm_ref, sem):
    cp = pltpu.make_async_copy(x_hbm_ref, o_hbm_ref, sem)
    cp.start()
    cp.wait()


def identity_copy(x):
    """Identity that materializes a fresh output buffer via one HBM->HBM DMA."""
    if x.size == 0:
        return x
    return pl.pallas_call(
        _identity_dma_kernel,
        out_shape=jax.ShapeDtypeStruct(x.shape, x.dtype),
        in_specs=[pl.BlockSpec(memory_space=pl.ANY)],
        out_specs=pl.BlockSpec(memory_space=pl.ANY),
        scratch_shapes=[pltpu.SemaphoreType.DMA],
    )(x)


if __name__ == "__main__":
    key = jax.random.PRNGKey(0)
    # NCHW input consistent with typical usage of this module.
    x = jax.random.normal(key, (2, 4, 16, 16), dtype=jnp.float32)

    # Primary (zero-traffic, aliased) path.
    y = identity(x)
    jax.block_until_ready(y)
    assert y.shape == x.shape and y.dtype == x.dtype
    assert bool(jnp.array_equal(y, x))

    # Materialized-copy path: single HBM->HBM DMA, fresh buffer.
    y2 = identity_copy(x)
    jax.block_until_ready(y2)
    assert y2.shape == x.shape and y2.dtype == x.dtype
    assert bool(jnp.array_equal(y2, x))

    # Narrow dtype: no tile-size / VMEM tuning needed on the DMA path.
    xb = x.astype(jnp.bfloat16)
    yb = identity_copy(xb)
    jax.block_until_ready(yb)
    assert yb.shape == xb.shape and yb.dtype == xb.dtype
    assert bool(jnp.array_equal(yb, xb))

    # Ragged shape (not divisible by 128): previously forced pad + slice HBM
    # passes; now handled directly as a whole-ref copy.
    xr = jax.random.normal(jax.random.PRNGKey(1), (2, 3, 10, 10), dtype=jnp.float32)
    yr = identity_copy(xr)
    jax.block_until_ready(yr)
    assert yr.shape == xr.shape and yr.dtype == xr.dtype
    assert bool(jnp.array_equal(yr, xr))

    print("KERNEL_OK")
</pallas_src>

<mosaic_0001>
module attributes {stable_mosaic.version = 11 : i64} {
  func.func @_identity_alias_kernel(%arg0: memref<2x4x16x16xf32, #tpu.memory_space<any>>, %arg1: memref<2x4x16x16xf32, #tpu.memory_space<any>>) attributes {dimension_semantics = [], scalar_prefetch = 0 : i64, scratch_operands = 0 : i64, tpu.core_type = #tpu.core_type<tc>} {
    return
  }
}

</mosaic_0001>

<bundles_post_ra>
// kernel: tpu_custom_call.1
= control target key start
LH: loop header
LB: loop body
LE: loop exit
PB: predicated region body
PF: predicated region fallthrough
CT: control target
= control target key end

     0   :  { %s16_s0 = inlined_call_operand.hbm [shape: f32[2,4,16,16], index: 0, kind: input, shape index: {}, may-alias: {0,1}]   ;;  %s17_s1 = inlined_call_operand.hbm [shape: f32[2,4,16,16], index: 1, kind: output, shape index: {}, may-alias: {0,1}]  }

</bundles_post_ra>
